<compile_context>
chip_gen: v7x
topology: tpu7x:2x2x1
jax: 0.10.0
libtpu: 0.0.40
codegen_flags: <defaults>
</compile_context>

<pallas_src>
import functools

import jax
import jax.numpy as jnp
from jax import lax
from jax.experimental import pallas as pl
from jax.experimental.pallas import tpu as pltpu

LANES = 128
SUBLANES = 8
BLOCK_ELEMS = SUBLANES * LANES      # 1024 = one minimal (8,128) tile
MAX_ROW_TILE = 2048                 # 2048*128*4B = 1 MiB per input per buffer
N_SHARDS = 2                        # parallel axis (megacore on v7x; no-op on 1-TC chips)


def _mae_partial_sum_kernel(o_ref, t_ref, out_ref, *,
                            rows, row_tile, blocks_per_shard, needs_mask):
    c = pl.program_id(0)            # shard ("parallel")
    i = pl.program_id(1)            # row-block within shard ("arbitrary" / reduction)

    @pl.when(i == 0)
    def _():
        out_ref[...] = jnp.zeros_like(out_ref)

    # Subtract/abs in the native dtype (bf16 VALU on v6e/v7x), accumulate in f32.
    absd = jnp.abs(o_ref[...] - t_ref[...]).astype(jnp.float32)

    if needs_mask:
        # Only emitted when the row range does not tile evenly; zero out rows
        # past the end of the array (their VMEM contents are stale/undefined).
        blk = c * blocks_per_shard + i
        valid = rows - blk * row_tile              # may be <= 0 (fully masked block)
        row_ids = lax.broadcasted_iota(jnp.int32, (row_tile, LANES), 0)
        absd = jnp.where(row_ids < valid, absd, 0.0)

    # (row_tile,128) -> (row_tile//8, 8, 128): leading-axis sum = pure VPU vadds.
    psum = jnp.sum(absd.reshape(row_tile // SUBLANES, SUBLANES, LANES), axis=0)
    out_ref[...] += psum


def _mae_sum_pallas(o2d, t2d, rows, row_tile):
    """Sum of |o - t| over a (rows, 128) slab (rows, row_tile multiples of 8)."""
    n_blocks = pl.cdiv(rows, row_tile)
    blocks_per_shard = pl.cdiv(n_blocks, N_SHARDS)
    needs_mask = (N_SHARDS * blocks_per_shard * row_tile) != rows

    if needs_mask:
        # Clamp so over-allocated / partial blocks never DMA out of bounds;
        # the in-kernel mask zeroes any duplicated / padded rows.
        def in_map(c, i):
            return (jnp.minimum(c * blocks_per_shard + i, n_blocks - 1), 0)
    else:
        def in_map(c, i):
            return (c * blocks_per_shard + i, 0)

    kernel = functools.partial(
        _mae_partial_sum_kernel,
        rows=rows,
        row_tile=row_tile,
        blocks_per_shard=blocks_per_shard,
        needs_mask=needs_mask,
    )

    partials = pl.pallas_call(
        kernel,
        out_shape=jax.ShapeDtypeStruct((N_SHARDS * SUBLANES, LANES), jnp.float32),
        grid_spec=pltpu.PrefetchScalarGridSpec(
            num_scalar_prefetch=0,
            grid=(N_SHARDS, blocks_per_shard),
            in_specs=[
                pl.BlockSpec((row_tile, LANES), in_map),
                pl.BlockSpec((row_tile, LANES), in_map),
            ],
            out_specs=pl.BlockSpec((SUBLANES, LANES), lambda c, i: (c, 0)),
        ),
        compiler_params=pltpu.CompilerParams(
            dimension_semantics=("parallel", "arbitrary"),
        ),
    )(o2d, t2d)

    # Single tiny cross-lane reduce of the (2*8,128) partials, done once.
    return jnp.sum(partials)


def mae_error(output: jax.Array, target: jax.Array) -> jax.Array:
    """Equivalent of torch.mean(torch.abs(output - target)) -> scalar f32."""
    assert output.shape == target.shape
    n = output.size
    if n == 0:
        return jnp.array(jnp.nan, dtype=jnp.float32)

    flat_o = output.reshape(-1)
    flat_t = target.reshape(-1)
    # Keep floating dtypes native (bf16 stays bf16 on v6e/v7x); promote otherwise.
    if (not jnp.issubdtype(flat_o.dtype, jnp.floating)
            or not jnp.issubdtype(flat_t.dtype, jnp.floating)
            or flat_o.dtype != flat_t.dtype):
        flat_o = flat_o.astype(jnp.float32)
        flat_t = flat_t.astype(jnp.float32)

    n_slab = (n // BLOCK_ELEMS) * BLOCK_ELEMS   # largest multiple of 8*128
    tail = n - n_slab

    total = jnp.zeros((), jnp.float32)
    if tail:
        # Ragged tail (< 1024 elements): plain jnp, avoids any full-array copy.
        total = total + jnp.sum(
            jnp.abs(flat_o[n_slab:].astype(jnp.float32)
                    - flat_t[n_slab:].astype(jnp.float32)))

    if n_slab:
        o_main = flat_o if tail == 0 else flat_o[:n_slab]
        t_main = flat_t if tail == 0 else flat_t[:n_slab]
        rows = n_slab // LANES                   # multiple of 8
        row_tile = min(MAX_ROW_TILE, rows)       # multiple of 8
        total = total + _mae_sum_pallas(
            o_main.reshape(rows, LANES),
            t_main.reshape(rows, LANES),
            rows, row_tile)

    return (total / jnp.float32(n)).astype(jnp.float32)


if __name__ == "__main__":
    key = jax.random.PRNGKey(0)
    k1, k2 = jax.random.split(key)
    shape = (2, 4, 16, 16)  # NCHW-style, but MAE is layout-agnostic
    output = jax.random.normal(k1, shape, dtype=jnp.float32)
    target = jax.random.normal(k2, shape, dtype=jnp.float32)

    result = jax.block_until_ready(mae_error(output, target))

    # Reference check in plain JAX.
    ref = jnp.mean(jnp.abs(output - target))
    assert jnp.allclose(result, ref, rtol=1e-5, atol=1e-6), (result, ref)

    print("KERNEL_OK")
</pallas_src>

<mosaic_0001>
module attributes {stable_mosaic.version = 11 : i64} {
  func.func @_mae_partial_sum_kernel(%arg0: i32, %arg1: i32, %arg2: memref<16x128xf32, #tpu.memory_space<vmem>>, %arg3: memref<16x128xf32, #tpu.memory_space<vmem>>, %arg4: memref<8x128xf32, #tpu.memory_space<vmem>>) attributes {dimension_semantics = [#tpu.dimension_semantics<parallel>, #tpu.dimension_semantics<arbitrary>], iteration_bounds = array<i64: 2, 1>, scalar_prefetch = 0 : i64, scratch_operands = 0 : i64, tpu.core_type = #tpu.core_type<tc>, window_params = [{transform_indices = @transform_0, window_bounds = array<i64: 16, 128>}, {transform_indices = @transform_1, window_bounds = array<i64: 16, 128>}, {transform_indices = @transform_2, window_bounds = array<i64: 8, 128>}]} {
    %c0_i32 = arith.constant 0 : i32
    %0 = arith.cmpi eq, %arg1, %c0_i32 : i32
    %1 = arith.extui %0 : i1 to i32
    %c0_i32_0 = arith.constant 0 : i32
    %2 = arith.cmpi ne, %1, %c0_i32_0 : i32
    scf.if %2 {
      %cst_10 = arith.constant 0.000000e+00 : f32
      %21 = vector.broadcast %cst_10 : f32 to vector<8x128xf32>
      %c0_11 = arith.constant 0 : index
      %c0_12 = arith.constant 0 : index
      %22 = vector.load %arg4[%c0_11, %c0_12] : memref<8x128xf32, #tpu.memory_space<vmem>>, vector<8x128xf32>
      tpu.vector_store %arg4[%c0_11, %c0_12], %21 {strides = array<i32>} : memref<8x128xf32, #tpu.memory_space<vmem>>, vector<8x128xf32>,
    } else {
    }
    %c0 = arith.constant 0 : index
    %c0_1 = arith.constant 0 : index
    %3 = vector.load %arg2[%c0, %c0_1] : memref<16x128xf32, #tpu.memory_space<vmem>>, vector<16x128xf32>
    %c0_2 = arith.constant 0 : index
    %c0_3 = arith.constant 0 : index
    %4 = vector.load %arg3[%c0_2, %c0_3] : memref<16x128xf32, #tpu.memory_space<vmem>>, vector<16x128xf32>
    %5 = arith.subf %3, %4 : vector<16x128xf32>
    %6 = math.absf %5 : vector<16x128xf32>
    %c1_i32 = arith.constant 1 : i32
    %7 = arith.muli %arg0, %c1_i32 : i32
    %8 = arith.addi %7, %arg1 : i32
    %c16_i32 = arith.constant 16 : i32
    %9 = arith.muli %8, %c16_i32 : i32
    %c16_i32_4 = arith.constant 16 : i32
    %10 = arith.subi %c16_i32_4, %9 : i32
    %11 = tpu.iota {dimensions = array<i32: 0>} : vector<16x128xi32>
    %12 = vector.broadcast %10 : i32 to vector<16x128xi32>
    %13 = arith.cmpi slt, %11, %12 : vector<16x128xi32>
    %cst = arith.constant 0.000000e+00 : f32
    %14 = vector.broadcast %cst : f32 to vector<16x128xf32>
    %15 = arith.select %13, %6, %14 : vector<16x128xi1>, vector<16x128xf32>
    %16 = vector.shape_cast %15 : vector<16x128xf32> to vector<2x8x128xf32>
    %cst_5 = arith.constant dense<0.000000e+00> : vector<8x128xf32>
    %17 = vector.multi_reduction <add>, %16, %cst_5 [0] : vector<2x8x128xf32> to vector<8x128xf32>
    %c0_6 = arith.constant 0 : index
    %c0_7 = arith.constant 0 : index
    %18 = vector.load %arg4[%c0_6, %c0_7] : memref<8x128xf32, #tpu.memory_space<vmem>>, vector<8x128xf32>
    %19 = arith.addf %18, %17 : vector<8x128xf32>
    %c0_8 = arith.constant 0 : index
    %c0_9 = arith.constant 0 : index
    %20 = vector.load %arg4[%c0_8, %c0_9] : memref<8x128xf32, #tpu.memory_space<vmem>>, vector<8x128xf32>
    tpu.vector_store %arg4[%c0_8, %c0_9], %19 {strides = array<i32>} : memref<8x128xf32, #tpu.memory_space<vmem>>, vector<8x128xf32>,
    return
  }
  func.func @transform_0(%arg0: i32, %arg1: i32) -> (i32, i32) {
    %c1_i32 = arith.constant 1 : i32
    %0 = arith.muli %arg0, %c1_i32 : i32
    %1 = arith.addi %0, %arg1 : i32
    %c0_i32 = arith.constant 0 : i32
    %2 = arith.minsi %1, %c0_i32 : i32
    %c0_i32_0 = arith.constant 0 : i32
    %c0_i32_1 = arith.constant 0 : i32
    return %2, %c0_i32_0 : i32, i32
  }
  func.func @transform_1(%arg0: i32, %arg1: i32) -> (i32, i32) {
    %c1_i32 = arith.constant 1 : i32
    %0 = arith.muli %arg0, %c1_i32 : i32
    %1 = arith.addi %0, %arg1 : i32
    %c0_i32 = arith.constant 0 : i32
    %2 = arith.minsi %1, %c0_i32 : i32
    %c0_i32_0 = arith.constant 0 : i32
    %c0_i32_1 = arith.constant 0 : i32
    return %2, %c0_i32_0 : i32, i32
  }
  func.func @transform_2(%arg0: i32, %arg1: i32) -> (i32, i32) {
    %c0_i32 = arith.constant 0 : i32
    %c0_i32_0 = arith.constant 0 : i32
    return %arg0, %c0_i32 : i32, i32
  }
}

</mosaic_0001>

<bundles_post_ra>
// kernel: tpu_custom_call.1
= control target key start
LH: loop header
LB: loop body
LE: loop exit
PB: predicated region body
PF: predicated region fallthrough
CT: control target
= control target key end

     0   :  { %7 = vsyncpa [#allocation3], 0  ;;  %s891_s0 = inlined_call_operand.hbm [shape: f32[16,128], index: 0, kind: input, shape index: {}]   ;;  %s892_s1 = inlined_call_operand.hbm [shape: f32[16,128], index: 1, kind: input, shape index: {}]   ;;  %s893_s2 = inlined_call_operand.hbm [shape: f32[16,128], index: 2, kind: output, shape index: {}]  }
   0x1   :  { %9 = vsyncpa [#allocation3 + $0x1], 0 }
   0x2   :  { %10 = vsyncpa [#allocation6], 0 }
   0x3   :  { %12 = vsyncpa [#allocation6 + $0x1], 0 }
   0x4   :  { %13 = vsyncpa [#allocation4], 0 }
   0x5   :  { %15 = vsyncpa [#allocation4 + $0x1], 0  ;;  %s687_s9 = smov 0   ;;  %s689_s10 = smov 0  }
   0x6   :  { %s691_s11 = smov 0   ;;  %s693_s12 = smov 0  }
   0x7   :  { %s695_s13 = smov 0   ;;  %s697_s14 = smov 0  }
   0x8   :  { %s699_s15 = smov 0   ;;  %s701_s16 = smov 0  }
   0x9 LB: > { %s383_s17 = sadd.s32 4294967295, %s665_s16   ;;  %s384_s18 = sadd.s32 4294967294, %s665_s16   ;;  %s665_s16 = sphi %s701_s16, %s21_s16   ;;  %s661_s15 = sphi %s699_s15, %s912_s15   ;;  %s657_s14 = sphi %s697_s14, %s911_s14   ;;  %s653_s13 = sphi %s695_s13, %s881_s13   ;;  %s649_s12 = sphi %s693_s12, %s910_s12   ;;  %s645_s11 = sphi %s691_s11, %s909_s11   ;;  %s641_s10 = sphi %s689_s10, %s908_s10   ;;  %s637_s9 = sphi %s687_s9, %s907_s9  }
   0xa   : > { %s33_s19 = sadd.s32 1, %s661_s15  ;;  %p634_p1 = scmp.ne.s32.totalorder %s653_s13, 0 }
   0xb   : > { %p35_p0 = scmp.ge.s32.totalorder %s33_s19, 2  ;;  %p54_p2 = scmp.eq.s32.totalorder %s665_s16, 0 }
   0xc   : > { %p59_p3 = scmp.ne.s32.totalorder %s653_s13, %s649_s12  ;;  %p60_p5 = scmp.eq.s32.totalorder %s383_s17, 0 }
   0xd   : > { %s914_s19 = smov (%p35_p0, %s33_s19), 0  ;;  %p733_p4 = por %p634_p1, %p54_p2 }
   0xe   : > { %p737_p6 = por %p60_p5, %p59_p3  ;;  %s101_s22 = ssub.s32 %s661_s15, %s914_s19 }
   0xf   : > { %p102_p7 = scmp.eq.s32.totalorder %s101_s22, 0  ;;  %s104_s23 = sadd.s32 1, %s645_s11 }
  0x10   : > { %s897_s21 = scalar_select %p737_p6, 1, 0 }
  0x11   : > { %s745_s24 = scalar_select %p102_p7, %s645_s11, %s104_s23  }
  0x12   : > { %p114_p8 = scmp.ne.s32.totalorder %s645_s11, %s641_s10  ;;  %p115_p9 = scmp.eq.s32.totalorder %s383_s17, 1 }
  0x13   : > { %p120_p10 = scmp.ne.s32.totalorder %s641_s10, %s637_s9  ;;  %p121_p11 = scmp.eq.s32.totalorder %s384_s18, 1 }
  0x14   : > { %p751_p12 = por %p115_p9, %p114_p8  ;;  %p421_p1 = scmp.lt.s32.totalorder %s665_s16, 2 }
  0x15   : > { %p756_p0 = por %p121_p11, %p120_p10  ;;  %s667_s27 = smov [#allocation2]  }
  0x16   : > { %s898_s25 = scalar_select %p751_p12, 1, 0 }
  0x17   : > { %s899_s26 = scalar_select %p756_p0, 1, 0 }
  0x18   : > { %s155_s28 = sshll.u32 %s667_s27, 4  ;;  %p763_p2 = pnand %p421_p1, %p733_p4  ;;  %s156_s28 = int_to_ptr.vmem [resolvable:$true] %s155_s28 }
  0x19   : > { %s498_s4 = scalar_lea.hbm %s891_s0, 256 }
  0x1a   : > { %p499_p3 = scmp.ne.s32.totalorder %s891_s0, %s498_s4  ;;  %p500_p5 = pneg %p763_p2 }
  0x1b   : > { %p505_p8 = scmp.lt.u32.totalorder %s498_s4, %s498_s4  ;;  %p507_p9 = scmp.lt.u32.totalorder %s498_s4, %s891_s0 }
  0x1c   : > { %p501_p7 = pnand %p500_p5, %p499_p3 }
  0x1d   : > { %p508_p10 = por %p507_p9, %p505_p8 }
  0x1e   : > { %p502_p4 = pneg %p501_p7 }
  0x20   : > { %p509_p11 = pnand %p508_p10, %p502_p4 }
  0x22   : > { %512 = shalt.err (!%p509_p11)
}
  0x23   : > { %s513_s12 = scalar_lea.vmem %s156_s28, 256  ;;  %s520_s17 = scalar_lea.vmem %s156_s28, 512 }
  0x24   : > { %p514_p1 = scmp.ne.s32.totalorder %s156_s28, %s513_s12  ;;  %p521_p12 = scmp.lt.s32.totalorder %s156_s28, %s156_s28 }
  0x25   : > { %p522_p6 = scmp.lt.s32.totalorder %s520_s17, %s513_s12 }
  0x26   : > { %p516_p13 = pnand %p514_p1, %p500_p5 }
  0x27   : > { %p523_p3 = por %p522_p6, %p521_p12 }
  0x28   : > { %p517_p0 = pneg %p516_p13 }
  0x2a   : > { %p524_p7 = pnand %p523_p3, %p517_p0 }
  0x2c   : > { %527 = shalt.err (!%p524_p7)
}
  0x2d   : > { %s668_s18 = smov 128   ;;  %s669_s20 = smov 8  }
  0x2e   : > { %413 = dma.hbm_to_vmem [thread:$0]  (!%p763_p2), %s891_s0, 256, %s156_s28, [#allocation3], %s668_s18, %s668_s18, %s669_s20  }
  0x2f   : > { %p393_p13 = scmp.ge.s32.totalorder %s665_s16, 1  ;;  %p187_p4 = scmp.lt.s32.totalorder %s665_s16, 3 }
  0x30   : > { %s670_s30 = smov [#allocation5]   ;;  %s528_s6 = scalar_lea.hbm %s892_s1, 256 }
  0x31   : > { %p794_p8 = pnand %p393_p13, %p187_p4  ;;  %s179_s3 = sshll.u32 %s670_s30, 4  ;;  %s180_s3 = int_to_ptr.vmem [resolvable:$true] %s179_s3 }
  0x32   : > { %p529_p6 = scmp.ne.s32.totalorder %s892_s1, %s528_s6  ;;  %p535_p9 = scmp.lt.u32.totalorder %s528_s6, %s528_s6 }
  0x33   : > { %s901_s27 = scalar_select %p794_p8, 1, 0 }
  0x34   : > { %p531_p12 = pnand %p529_p6, %p500_p5  ;;  %p537_p10 = scmp.lt.u32.totalorder %s528_s6, %s892_s1 }
  0x36   : > { %p532_p0 = pneg %p531_p12  ;;  %p538_p11 = por %p537_p10, %p535_p9 }
  0x38   : > { %p539_p1 = pnand %p538_p11, %p532_p0 }
  0x3a   : > { %542 = shalt.err (!%p539_p1)
}
  0x3b   : > { %s543_s17 = scalar_lea.vmem %s180_s3, 256  ;;  %s550_s22 = scalar_lea.vmem %s180_s3, 512 }
  0x3c   : > { %p544_p3 = scmp.ne.s32.totalorder %s180_s3, %s543_s17  ;;  %p551_p4 = scmp.lt.s32.totalorder %s180_s3, %s180_s3 }
  0x3d   : > { %p552_p8 = scmp.lt.s32.totalorder %s550_s22, %s543_s17 }
  0x3e   : > { %p546_p7 = pnand %p544_p3, %p500_p5 }
  0x3f   : > { %p553_p6 = por %p552_p8, %p551_p4 }
  0x40   : > { %p547_p13 = pneg %p546_p7 }
  0x42   : > { %p554_p12 = pnand %p553_p6, %p547_p13 }
  0x44   : > { %557 = shalt.err (!%p554_p12)
}
  0x45   : > { %416 = dma.hbm_to_vmem [thread:$0]  (!%p763_p2), %s892_s1, 256, %s180_s3, [#allocation6], %s668_s18, %s668_s18, %s669_s20  }
  0x46   : > { %p902_p0 = scmp.ne.s32.totalorder %s901_s27, 0 }
  0x47   : > { %s193_s4 = sand.u32 (!%p902_p0), 1, %s653_s13   ;;  %p903_p5 = scmp.ne.s32.totalorder (!%p902_p0), %s897_s21, 0 }
  0x48   : > { %191 = sbr.rel (%p902_p0) target bundleno = 110 (0x6e), region = 28  ;;  %s394_s5 = sshll.u32 (!%p902_p0), %s193_s4, 4 }
  0x49   : > { %s194_s6 = scalar_lea.sflag (!%p902_p0), [#allocation3], %s193_s4  ;;  %s197_s7 = scalar_lea.vmem (!%p902_p0), [#allocation2], %s394_s5 }
  0x4f   : > { %623 = dma.done.wait (%p903_p5), %s194_s6, 256  }
  0x50   : > { %625 = vsyncadd (%p903_p5), %s194_s6, 4294967040  ;;  %s203_s29 = scalar_lea.sflag [#allocation6], %s193_s4  ;;  %s206_s8 = scalar_lea.vmem [#allocation5], %s394_s5 }
  0x51   : > { %627 = dma.done.wait (%p903_p5), %s203_s29, 256  }
  0x52   : > { %629 = vsyncadd (%p903_p5), %s203_s29, 4294967040  ;;  %s397_s18 = sshll.u32 %s657_s14, 4  ;;  %v256_v0 = vlaneseq  ;;  %s229_s27 = sand.u32 1, %s641_s10   ;;  %v245_v4 = vld [vmem:[%s197_s7] sm:$0xff]  ;;  %v246_v5 = vld [vmem:[%s197_s7 + $0x8] sm:$0xff] }
  0x53   : > { %s255_s20 = ssub.s32 16, %s397_s18  ;;  %s396_s3 = sshll.u32 %s229_s27, 3  ;;  %v247_v6 = vld [vmem:[%s206_s8] sm:$0xff]  ;;  %v248_v7 = vld [vmem:[%s206_s8 + $0x8] sm:$0xff] }
  0x54   : > { %v257_v1 = vshrl.u32 %v256_v0, 7  ;;  %v259_v3 = vstv %s255_s20  ;;  %v249_v8 = vsub.f32 %v245_v4, %v247_v6  ;;  %v250_v9 = vsub.f32 %v246_v5, %v248_v7  ;;  %s399_s21 = sshll.u32 %s657_s14, 7  ;;  %s231_s28 = scalar_lea.vmem [#allocation7], %s396_s3 }
  0x55   : > { %s282_s12 = sshll.u32 %s231_s28, 4  ;;  %s838_s23 = scalar_lea.hbm %s893_s2, %s399_s21  ;;  %s840_s12 = int_to_ptr.vmem [resolvable:$true] %s282_s12 }
  0x56   : > { %v258_v2 = vadd.s32 8, %v257_v1  ;;  %vm260_vm0 = vcmp.lt.s32.totalorder %v257_v1, %v259_v3  ;;  %v251_v10 = vand.u32 2147483647, %v249_v8  ;;  %v252_v11 = vand.u32 2147483647, %v250_v9  ;;  %s269_s30 = scalar_lea.sflag [#allocation4], %s229_s27 }
  0x57   : > { %s558_s4 = scalar_lea.vmem %s840_s12, 128  ;;  %p904_p8 = scmp.ne.s32.totalorder %s898_s25, 0 }
  0x58   : > { %vm261_vm1 = vcmp.lt.s32.totalorder %v258_v2, %v259_v3  ;;  %v262_v12 = vsel %vm260_vm0, %v251_v10, 0.0  ;;  %p559_p2 = scmp.ne.s32.totalorder %s840_s12, %s558_s4  ;;  %s671_s14 = smov [#allocation7]  }
  0x59   : > { %v263_v13 = vsel %vm261_vm1, %v252_v11, 0.0  ;;  %s562_s5 = sshll.u32 %s671_s14, 4  ;;  %s563_s5 = int_to_ptr.vmem [resolvable:$false] %s562_s5 }
  0x5a   : > { %v264_v14 = vadd.f32 %v263_v13, %v262_v12  ;;  %p560_p9 = pnand %p559_p2, %p904_p8  ;;  %s564_s6 = scalar_lea.vmem %s563_s5, 256 }
  0x5b   : > { %p565_p11 = scmp.lt.s32.totalorder %s840_s12, %s563_s5  ;;  %p566_p1 = scmp.lt.s32.totalorder %s564_s6, %s558_s4 }
  0x5c   : > { %267 = vst [vmem:[%s231_s28] sm:$0xff] %v264_v14  ;;  %p561_p10 = pneg %p560_p9 }
  0x5d   : > { %p567_p3 = por %p566_p1, %p565_p11 }
  0x5f   : > { %p568_p7 = pnand %p567_p3, %p561_p10 }
  0x61   : > { %571 = shalt.err (!%p568_p7)
}
  0x62   : > { %s572_s7 = scalar_lea.hbm %s838_s23, 128  ;;  %s576_s18 = scalar_lea.hbm %s893_s2, 256 }
  0x63   : > { %p573_p13 = scmp.ne.s32.totalorder %s838_s23, %s572_s7  ;;  %p577_p12 = scmp.lt.u32.totalorder %s838_s23, %s893_s2 }
  0x64   : > { %p578_p0 = scmp.lt.u32.totalorder %s576_s18, %s572_s7  ;;  %p580_p2 = scmp.lt.u32.totalorder %s572_s7, %s838_s23 }
  0x65   : > { %p574_p4 = pnand %p573_p13, %p904_p8 }
  0x66   : > { %p579_p5 = por %p578_p0, %p577_p12 }
  0x67   : > { %p575_p6 = pneg %p574_p4 }
  0x68   : > { %p581_p9 = por %p580_p2, %p579_p5 }
  0x6a   : > { %p582_p10 = pnand %p581_p9, %p575_p6 }
  0x6c   : > { %585 = shalt.err (!%p582_p10)
}
  0x6d   : > { %408 = dma.vmem_to_hbm [thread:$0]  (%p904_p8), %s840_s12, 128, %s838_s23, %s269_s30  }
  0x6e PF: > { %s294_s3 = sand.u32 1, %s637_s9   ;;  %p905_p11 = scmp.ne.s32.totalorder %s899_s26, 0 }
  0x6f   : > { %p906_p1 = scmp.ge.s32.totalorder %s665_s16, 2  ;;  %s295_s21 = scalar_lea.sflag [#allocation4], %s294_s3 }
  0x71   : > { %p418_p3 = pnand %p906_p1, %p905_p11 }
  0x73   : > { %631 = dma.done.wait (!%p418_p3), %s295_s21, 128  }
  0x74   : > { %633 = vsyncadd (!%p418_p3), %s295_s21, 4294967168  ;;  %s21_s16 = sadd.s32 1, %s665_s16   ;;  %s907_s9 = smov %s641_s10 }
  0x75   : > { %p18_p7 = scmp.ge.s32.totalorder %s21_s16, 4   ;;  %s908_s10 = smov %s645_s11 }
  0x76   : > { %s909_s11 = smov %s745_s24  ;;  %s910_s12 = smov %s653_s13 }
  0x77   : > { %s881_s13 = smov 0   ;;  %s911_s14 = smov %s661_s15 }
  0x78   : > { %s912_s15 = smov %s914_s19  ;;  %20 = sbr.rel (!%p18_p7) target bundleno = 9 (0x9), region = 90 }
  0x7f   :  { %300 = vsyncpa [#allocation3], 1 }
  0x80   :  { %302 = vsyncpa [#allocation3 + $0x1], 1 }
  0x81   :  { %303 = vsyncpa [#allocation6], 1 }
  0x82   :  { %305 = vsyncpa [#allocation6 + $0x1], 1 }
  0x83   :  { %306 = vsyncpa [#allocation4], 1 }
  0x84   :  { %308 = vsyncpa [#allocation4 + $0x1], 1 }

</bundles_post_ra>
